<compile_context>
chip_gen: v6e
topology: v6e:2x2x1
jax: 0.10.0
libtpu: 0.0.40
codegen_flags: <defaults>
</compile_context>

<pallas_src>
import functools

import jax
import jax.numpy as jnp
from jax import lax
from jax.experimental import pallas as pl
from jax.experimental.pallas import tpu as pltpu


_LANES = 128
_MIN_KERNEL_ELEMENTS = 1 << 20  # below this, plain jnp.sum (XLA fusion) wins


# ---------------------------------------------------------------------------
# Forward pass of the abstract module: the trivial-reward constant.
# No pallas_call here (review: a Mosaic custom call is pure dispatch overhead
# for a scalar copy and blocks fusion).
# ---------------------------------------------------------------------------
def reward_calculator_forward(trivial_reward):
    """Returns the trivial reward constant as a float32 scalar."""
    return jnp.reshape(jnp.asarray(trivial_reward, dtype=jnp.float32), ())


# ---------------------------------------------------------------------------
# Pallas reduction kernel: partial sums of a lane-dense (rows, 128) slab.
# ---------------------------------------------------------------------------
def _partial_sum_kernel(x_ref, out_ref, *, tile_rows, lanes, valid_rows, ragged):
    # x_ref:   (tile_rows, 128) VMEM tile (original dtype; cast here, not in HBM)
    # out_ref: (8, 128) f32 accumulator block, resident across the grid axis.
    i = pl.program_id(0)

    @pl.when(i == 0)
    def _init():
        out_ref[...] = jnp.zeros_like(out_ref)

    xv = x_ref[...].astype(jnp.float32)

    if ragged:
        # Last block may extend past the array; mask unspecified rows BEFORE
        # summing (zero is sum-safe).
        row_ids = (
            lax.broadcasted_iota(jnp.int32, (tile_rows, lanes), 0) + i * tile_rows
        )
        xv = jnp.where(row_ids < valid_rows, xv, jnp.float32(0.0))

    if tile_rows % 8 == 0:
        # Pure vreg-to-vreg VPU adds: fold the tile onto one (8,128) vreg.
        out_ref[...] += jnp.sum(xv.reshape(tile_rows // 8, 8, lanes), axis=0)
    else:
        # Tiny-input edge case (rows < 8): single cross-sublane reduce.
        out_ref[0:1, :] = out_ref[0:1, :] + jnp.sum(xv, axis=0, keepdims=True)


def _tiled_sum_pallas(x, *, max_tile_rows=16384):
    """sum(x) in float32 via a tiled, pipelined Pallas reduction."""
    total = x.size
    if total == 0:
        return jnp.float32(0.0)

    x_flat = jnp.reshape(x, (-1,))
    pad = (-total) % _LANES
    if pad:
        # Only the final partial 128-lane row is padded (<= 127 elements).
        x_flat = jnp.pad(x_flat, (0, pad))
    rows = (total + pad) // _LANES
    x2d = jnp.reshape(x_flat, (rows, _LANES))

    if rows >= 8:
        tile_rows = min(max_tile_rows, (rows // 8) * 8)  # sublane-aligned, <= rows
    else:
        tile_rows = rows                                  # equals full dim (allowed)
    num_tiles = pl.cdiv(rows, tile_rows)
    ragged = (rows % tile_rows) != 0

    kernel = functools.partial(
        _partial_sum_kernel,
        tile_rows=tile_rows,
        lanes=_LANES,
        valid_rows=rows,
        ragged=ragged,
    )

    cost = pl.CostEstimate(
        flops=total,
        transcendentals=0,
        bytes_accessed=total * x.dtype.itemsize + 8 * _LANES * 4,
    )

    partial = pl.pallas_call(
        kernel,
        out_shape=jax.ShapeDtypeStruct((8, _LANES), jnp.float32),
        grid=(num_tiles,),
        in_specs=[pl.BlockSpec((tile_rows, _LANES), lambda i: (i, 0))],
        out_specs=pl.BlockSpec((8, _LANES), lambda i: (0, 0)),
        compiler_params=pltpu.CompilerParams(
            dimension_semantics=("arbitrary",),
            vmem_limit_bytes=32 * 1024 * 1024,
        ),
        cost_estimate=cost,
    )(x2d)

    # Final 1024-element reduce is trivial; XLA fuses it with downstream ops.
    return jnp.sum(partial)


def _tiled_sum(x):
    if x.size < _MIN_KERNEL_ELEMENTS:
        # Tiny observations: custom-call dispatch costs more than the reduce.
        return jnp.sum(x, dtype=jnp.float32)
    return _tiled_sum_pallas(x)


# ---------------------------------------------------------------------------
# Gradient-preserving contract: reward = trivial_reward * sum(x).
# custom_vjp so grads flow through the (otherwise non-differentiable) kernel.
# ---------------------------------------------------------------------------
@jax.custom_vjp
def trivial_reward_weighted_sum(x, w):
    return _tiled_sum(x) * jnp.reshape(w, ()).astype(jnp.float32)


def _trws_fwd(x, w):
    s = _tiled_sum(x)
    wf = jnp.reshape(w, ()).astype(jnp.float32)
    return s * wf, (s, wf, x, w)


def _trws_bwd(res, g):
    s, wf, x, w = res
    dx = jnp.broadcast_to((g * wf).astype(x.dtype), x.shape)
    dw = jnp.reshape(g * s, jnp.shape(w)).astype(w.dtype)
    return dx, dw


trivial_reward_weighted_sum.defvjp(_trws_fwd, _trws_bwd)


# TODO(synk): forward() is abstract in the PyTorch module (raises
# NotImplementedError); concrete reward logic lives in subclasses and is not
# translatable here — only the trivial-reward constant / weighted-sum contract
# is implemented.


if __name__ == "__main__":
    key = jax.random.PRNGKey(0)
    k1, k2 = jax.random.split(key)

    # Small NCHW observation consistent with an RL encoder input.
    x = jax.random.normal(k1, (2, 4, 16, 16), dtype=jnp.float32)
    # Ragged case: 20 rows of 128 lanes -> tile_rows=16, grid=2, masked tail.
    x_ragged = jax.random.normal(k2, (20, 128), dtype=jnp.bfloat16)

    # The module's trivial-reward parameter (0.0).
    trivial_reward = jnp.zeros((1,), dtype=jnp.float32)

    # --- Run the Pallas reduction kernel (forced, small shapes). ---
    s1 = jax.block_until_ready(_tiled_sum_pallas(x))
    assert jnp.allclose(s1, jnp.sum(x), rtol=1e-5, atol=1e-4)

    s2 = jax.block_until_ready(_tiled_sum_pallas(x_ragged))
    assert jnp.allclose(s2, jnp.sum(x_ragged, dtype=jnp.float32), rtol=1e-2, atol=1e-2)

    # --- Forward pass of the abstract module: trivial reward constant. ---
    reward = jax.block_until_ready(reward_calculator_forward(trivial_reward))
    assert reward.shape == () and reward.dtype == jnp.float32
    assert float(reward) == 0.0

    # --- Weighted-sum contract + gradient through the weight. ---
    reward_ws = jax.block_until_ready(trivial_reward_weighted_sum(x, trivial_reward))
    assert reward_ws.shape == () and float(reward_ws) == 0.0

    g_w = jax.block_until_ready(
        jax.grad(trivial_reward_weighted_sum, argnums=1)(x, trivial_reward)
    )
    assert jnp.allclose(g_w[0], jnp.sum(x), rtol=1e-5, atol=1e-4)

    print("KERNEL_OK")
</pallas_src>

<mosaic_0001>
module attributes {stable_mosaic.version = 11 : i64} {
  func.func @_partial_sum_kernel(%arg0: i32, %arg1: memref<16x128xf32, #tpu.memory_space<vmem>>, %arg2: memref<8x128xf32, #tpu.memory_space<vmem>>) attributes {dimension_semantics = [#tpu.dimension_semantics<arbitrary>], iteration_bounds = array<i64: 1>, scalar_prefetch = 0 : i64, scratch_operands = 0 : i64, tpu.core_type = #tpu.core_type<tc>, window_params = [{transform_indices = @transform_0, window_bounds = array<i64: 16, 128>}, {pipeline_mode = #tpu.pipeline_mode<synchronous>, transform_indices = @transform_1, window_bounds = array<i64: 8, 128>}]} {
    %c0_i32 = arith.constant 0 : i32
    %0 = arith.cmpi eq, %arg0, %c0_i32 : i32
    %1 = arith.extui %0 : i1 to i32
    %c0_i32_0 = arith.constant 0 : i32
    %2 = arith.cmpi ne, %1, %c0_i32_0 : i32
    scf.if %2 {
      %cst_6 = arith.constant 0.000000e+00 : f32
      %9 = vector.broadcast %cst_6 : f32 to vector<8x128xf32>
      %c0_7 = arith.constant 0 : index
      %c0_8 = arith.constant 0 : index
      %10 = vector.load %arg2[%c0_7, %c0_8] : memref<8x128xf32, #tpu.memory_space<vmem>>, vector<8x128xf32>
      tpu.vector_store %arg2[%c0_7, %c0_8], %9 {strides = array<i32>} : memref<8x128xf32, #tpu.memory_space<vmem>>, vector<8x128xf32>,
    } else {
    }
    %c0 = arith.constant 0 : index
    %c0_1 = arith.constant 0 : index
    %3 = vector.load %arg1[%c0, %c0_1] : memref<16x128xf32, #tpu.memory_space<vmem>>, vector<16x128xf32>
    %c0_2 = arith.constant 0 : index
    %c0_3 = arith.constant 0 : index
    %4 = vector.load %arg2[%c0_2, %c0_3] : memref<8x128xf32, #tpu.memory_space<vmem>>, vector<8x128xf32>
    %5 = vector.shape_cast %3 : vector<16x128xf32> to vector<2x8x128xf32>
    %cst = arith.constant dense<0.000000e+00> : vector<8x128xf32>
    %6 = vector.multi_reduction <add>, %5, %cst [0] : vector<2x8x128xf32> to vector<8x128xf32>
    %7 = arith.addf %4, %6 : vector<8x128xf32>
    %c0_4 = arith.constant 0 : index
    %c0_5 = arith.constant 0 : index
    %8 = vector.load %arg2[%c0_4, %c0_5] : memref<8x128xf32, #tpu.memory_space<vmem>>, vector<8x128xf32>
    tpu.vector_store %arg2[%c0_4, %c0_5], %7 {strides = array<i32>} : memref<8x128xf32, #tpu.memory_space<vmem>>, vector<8x128xf32>,
    return
  }
  func.func @transform_0(%arg0: i32) -> (i32, i32) {
    %c0_i32 = arith.constant 0 : i32
    %c0_i32_0 = arith.constant 0 : i32
    return %arg0, %c0_i32 : i32, i32
  }
  func.func @transform_1(%arg0: i32) -> (i32, i32) {
    %c0_i32 = arith.constant 0 : i32
    %c0_i32_0 = arith.constant 0 : i32
    %c0_i32_1 = arith.constant 0 : i32
    return %c0_i32, %c0_i32_0 : i32, i32
  }
}

</mosaic_0001>

<bundles_post_ra>
// kernel: tpu_custom_call.1
= control target key start
LH: loop header
LB: loop body
LE: loop exit
PB: predicated region body
PF: predicated region fallthrough
CT: control target
= control target key end

     0   :  { %6 = vsyncpa [#allocation3], 0  ;;  %s118_s0 = inlined_call_operand.hbm [shape: f32[16,128], index: 0, kind: input, shape index: {}]   ;;  %s119_s1 = inlined_call_operand.hbm [shape: f32[8,128], index: 1, kind: output, shape index: {}]  }
   0x1   :  { %7 = vsyncpa [#allocation4], 0  ;;  %s98_s6 = smov [#allocation2]  }
   0x2   :  { %s13_s7 = sshll.u32 %s98_s6, 4  ;;  %s14_s7 = int_to_ptr.vmem [resolvable:$true] %s13_s7 }
   0x3   :  { %s62_s8 = scalar_lea.vmem %s14_s7, 256  ;;  %p67_p1 = scmp.lt.s32.totalorder %s14_s7, %s14_s7 }
   0x4   :  { %p63_p0 = scmp.ne.s32.totalorder %s14_s7, %s62_s8  ;;  %p68_p2 = scmp.lt.s32.totalorder %s62_s8, %s62_s8 }
   0x6   :  { %p69_p3 = por %p68_p2, %p67_p1 }
   0x8   :  { %p70_p4 = pnand %p69_p3, %p63_p0 }
   0xa   :  { %73 = shalt.err (!%p70_p4)
}
   0xb   :  { %s99_s9 = smov 128   ;;  %s100_s10 = smov 8  }
   0xc   :  { %19 = dma.hbm_to_vmem [thread:$0]  %s118_s0, 256, %s14_s7, [#allocation3], %s99_s9, %s99_s9, %s100_s10  }
   0xd   :  { %94 = dma.done.wait [#allocation3], 256  }
   0xe   :  { %95 = vsyncadd [#allocation3], 4294967040  ;;  %v28_v0 = vld [vmem:[#allocation2] sm:$0xff]  ;;  %v29_v1 = vld [vmem:[#allocation2 + $0x8] sm:$0xff]  ;;  %s101_s13 = smov [#allocation5]  }
   0xf   :  { %s40_s14 = sshll.u32 %s101_s13, 4  ;;  %v31_v2 = vadd.f32 %v29_v1, %v28_v0  ;;  %s41_s14 = int_to_ptr.vmem [resolvable:$true] %s40_s14 }
  0x10   :  { %s74_s15 = scalar_lea.vmem %s41_s14, 128  ;;  %p79_p6 = scmp.lt.s32.totalorder %s41_s14, %s41_s14 }
  0x11   :  { %33 = vst [vmem:[#allocation5] sm:$0xff] %v31_v2  ;;  %p75_p5 = scmp.ne.s32.totalorder %s41_s14, %s74_s15  ;;  %p80_p7 = scmp.lt.s32.totalorder %s74_s15, %s74_s15 }
  0x13   :  { %p81_p8 = por %p80_p7, %p79_p6 }
  0x15   :  { %p82_p9 = pnand %p81_p8, %p75_p5 }
  0x17   :  { %85 = shalt.err (!%p82_p9)
}
  0x18   :  { %43 = dma.vmem_to_hbm [thread:$0]  %s41_s14, 128, %s119_s1, [#allocation4]  }
  0x19   :  { %96 = dma.done.wait [#allocation4], 128  }
  0x1a   :  { %97 = vsyncadd [#allocation4], 4294967168 }
  0x1b   :  { %47 = vsyncpa [#allocation3], 1 }
  0x1c   :  { %48 = vsyncpa [#allocation4], 1 }

</bundles_post_ra>
